<compile_context>
chip_gen: v5e
topology: v5e:2x2
jax: 0.10.0
libtpu: 0.0.40
codegen_flags: <defaults>
</compile_context>

<pallas_src>
import jax
import jax.numpy as jnp
import numpy as np
from jax.experimental import pallas as pl
from jax.experimental.pallas import tpu as pltpu


# ---------------------------------------------------------------------------
# Fused attention kernel: one batch row per grid step.
#   hid_ref : [1, 1, H]   (decoder hidden state)
#   enc_ref : [1, S, H]   (encoder outputs)
#   wh_ref  : [H, H]      = attn.weight[:, :H].T   (multiplies hidden)
#   we_ref  : [H, H]      = attn.weight[:, H:].T   (multiplies encoder outputs)
#   b_ref   : [1, H]      = attn.bias
#   v_ref   : [1, H]      = v.weight
#   out_ref : [1, 1, S]   (softmax attention weights)
# ---------------------------------------------------------------------------
def _attention_kernel(hid_ref, enc_ref, wh_ref, we_ref, b_ref, v_ref, out_ref):
    h = hid_ref[0]        # [1, H]
    enc = enc_ref[0]      # [S, H]

    # cat(hidden, enc) @ W.T  ==  hidden @ W_h^T + enc @ W_e^T   (hidden part computed once)
    h_proj = jnp.dot(h, wh_ref[...], preferred_element_type=jnp.float32) + b_ref[...]   # [1, H]
    e_proj = jnp.dot(enc, we_ref[...], preferred_element_type=jnp.float32)              # [S, H]
    energy = jnp.tanh(e_proj + h_proj)                                                  # [S, H]

    # v-score, contracted over H, produced lane-dense as a [1, S] row (no transpose).
    scores = jax.lax.dot_general(
        v_ref[...], energy,
        dimension_numbers=(((1,), (1,)), ((), ())),
        preferred_element_type=jnp.float32)                                             # [1, S]

    # Softmax over the source-length axis.
    m = jnp.max(scores, axis=-1, keepdims=True)
    e = jnp.exp(scores - m)
    att = e / jnp.sum(e, axis=-1, keepdims=True)

    out_ref[0] = att.astype(out_ref.dtype)                                              # [1, S]


def attention_pallas(hidden, encoder_outputs, wh_t, we_t, bias_row, v_row):
    """hidden: [B, H], encoder_outputs: [B, S, H] -> attention weights [B, S]."""
    B, S, H = encoder_outputs.shape
    hidden3 = hidden[:, None, :]  # [B, 1, H] so every operand block is full in its last 2 dims

    out3 = pl.pallas_call(
        _attention_kernel,
        out_shape=jax.ShapeDtypeStruct((B, 1, S), jnp.float32),
        grid=(B,),
        in_specs=[
            pl.BlockSpec((1, 1, H), lambda b: (b, 0, 0)),   # hidden row
            pl.BlockSpec((1, S, H), lambda b: (b, 0, 0)),   # encoder outputs row
            pl.BlockSpec((H, H), lambda b: (0, 0)),         # W_h^T (resident)
            pl.BlockSpec((H, H), lambda b: (0, 0)),         # W_e^T (resident)
            pl.BlockSpec((1, H), lambda b: (0, 0)),         # bias row (resident)
            pl.BlockSpec((1, H), lambda b: (0, 0)),         # v row (resident)
        ],
        out_specs=pl.BlockSpec((1, 1, S), lambda b: (b, 0, 0)),
        compiler_params=pltpu.CompilerParams(
            dimension_semantics=("parallel",),              # batch rows are independent
        ),
    )(hidden3, encoder_outputs, wh_t, we_t, bias_row, v_row)

    return out3[:, 0, :]                                    # [B, S]


# ---------------------------------------------------------------------------
# Parameter init (PyTorch-like uniform init) + pre-split/pre-transposed weights.
# ---------------------------------------------------------------------------
def init_attention_params(key, hid_dim):
    k1, k2, k3 = jax.random.split(key, 3)
    bound_attn = 1.0 / np.sqrt(2 * hid_dim)
    attn_w = jax.random.uniform(k1, (hid_dim, 2 * hid_dim), jnp.float32, -bound_attn, bound_attn)
    attn_b = jax.random.uniform(k2, (hid_dim,), jnp.float32, -bound_attn, bound_attn)
    bound_v = 1.0 / np.sqrt(hid_dim)
    v_w = jax.random.uniform(k3, (1, hid_dim), jnp.float32, -bound_v, bound_v)

    return {
        # PyTorch-layout originals (for the reference path)
        "attn_w": attn_w,                    # [H, 2H]
        "attn_b": attn_b,                    # [H]
        "v_w": v_w,                          # [1, H]
        # Kernel-friendly layouts, computed once at init (not per forward call)
        "wh_t": jnp.transpose(attn_w[:, :hid_dim]),   # [H, H]  multiplies hidden
        "we_t": jnp.transpose(attn_w[:, hid_dim:]),   # [H, H]  multiplies encoder outputs
        "bias_row": attn_b[None, :],                  # [1, H]
        "v_row": v_w,                                 # [1, H]
    }


@jax.jit
def attention_forward(params, hidden, encoder_outputs):
    return attention_pallas(hidden, encoder_outputs,
                            params["wh_t"], params["we_t"],
                            params["bias_row"], params["v_row"])


# ---------------------------------------------------------------------------
# Pure-JAX reference replicating the PyTorch forward exactly.
# ---------------------------------------------------------------------------
def attention_forward_ref(params, hidden, encoder_outputs):
    B, S, H = encoder_outputs.shape
    hid_rep = jnp.broadcast_to(hidden[:, None, :], (B, S, H))
    cat = jnp.concatenate([hid_rep, encoder_outputs], axis=2)        # [B, S, 2H]
    energy = jnp.tanh(cat @ params["attn_w"].T + params["attn_b"])   # [B, S, H]
    attention = jnp.squeeze(energy @ params["v_w"].T, axis=2)        # [B, S]
    return jax.nn.softmax(attention, axis=1)


if __name__ == "__main__":
    HID_DIM = 32
    B, S = 2, 8

    key = jax.random.PRNGKey(0)
    k_params, k_hid, k_enc = jax.random.split(key, 3)
    params = init_attention_params(k_params, HID_DIM)
    hidden = jax.random.normal(k_hid, (B, HID_DIM), jnp.float32)
    encoder_outputs = jax.random.normal(k_enc, (B, S, HID_DIM), jnp.float32)

    att = attention_forward(params, hidden, encoder_outputs)
    jax.block_until_ready(att)

    assert att.shape == (B, S)

    ref = attention_forward_ref(params, hidden, encoder_outputs)
    np.testing.assert_allclose(np.asarray(att), np.asarray(ref), atol=1e-5, rtol=1e-5)
    np.testing.assert_allclose(np.asarray(att).sum(axis=1), np.ones(B), atol=1e-5, rtol=1e-5)

    print("KERNEL_OK")
</pallas_src>

<mosaic_0001>
module attributes {stable_mosaic.version = 11 : i64} {
  func.func @_attention_kernel(%arg0: i32, %arg1: memref<1x1x32xf32, #tpu.memory_space<vmem>>, %arg2: memref<1x8x32xf32, #tpu.memory_space<vmem>>, %arg3: memref<32x32xf32, #tpu.memory_space<vmem>>, %arg4: memref<32x32xf32, #tpu.memory_space<vmem>>, %arg5: memref<1x32xf32, #tpu.memory_space<vmem>>, %arg6: memref<1x32xf32, #tpu.memory_space<vmem>>, %arg7: memref<1x1x8xf32, #tpu.memory_space<vmem>>) attributes {dimension_semantics = [#tpu.dimension_semantics<parallel>], iteration_bounds = array<i64: 2>, scalar_prefetch = 0 : i64, scratch_operands = 0 : i64, tpu.core_type = #tpu.core_type<tc>, window_params = [{transform_indices = @transform_0, window_bounds = array<i64: 1, 1, 32>}, {transform_indices = @transform_1, window_bounds = array<i64: 1, 8, 32>}, {pipeline_mode = #tpu.pipeline_mode<synchronous>, transform_indices = @transform_2, window_bounds = array<i64: 32, 32>}, {pipeline_mode = #tpu.pipeline_mode<synchronous>, transform_indices = @transform_3, window_bounds = array<i64: 32, 32>}, {pipeline_mode = #tpu.pipeline_mode<synchronous>, transform_indices = @transform_4, window_bounds = array<i64: 1, 32>}, {pipeline_mode = #tpu.pipeline_mode<synchronous>, transform_indices = @transform_5, window_bounds = array<i64: 1, 32>}, {transform_indices = @transform_6, window_bounds = array<i64: 1, 1, 8>}]} {
    %c0 = arith.constant 0 : index
    %c0_0 = arith.constant 0 : index
    %c0_1 = arith.constant 0 : index
    %0 = vector.load %arg1[%c0, %c0_0, %c0_1] : memref<1x1x32xf32, #tpu.memory_space<vmem>>, vector<1x1x32xf32>
    %1 = vector.shape_cast %0 : vector<1x1x32xf32> to vector<1x32xf32>
    %c0_2 = arith.constant 0 : index
    %c0_3 = arith.constant 0 : index
    %c0_4 = arith.constant 0 : index
    %2 = vector.load %arg2[%c0_2, %c0_3, %c0_4] : memref<1x8x32xf32, #tpu.memory_space<vmem>>, vector<1x8x32xf32>
    %3 = vector.shape_cast %2 : vector<1x8x32xf32> to vector<8x32xf32>
    %c0_5 = arith.constant 0 : index
    %c0_6 = arith.constant 0 : index
    %4 = vector.load %arg3[%c0_5, %c0_6] : memref<32x32xf32, #tpu.memory_space<vmem>>, vector<32x32xf32>
    %cst = arith.constant dense<0.000000e+00> : vector<1x32xf32>
    %5 = tpu.matmul %1, %4, %cst {dimension_numbers = #tpu.dot_dimension_numbers<[1], [0], [0], [1], [0, 0, 1, 1], [], []>} : vector<1x32xf32>, vector<32x32xf32>, vector<1x32xf32> -> vector<1x32xf32>
    %c0_7 = arith.constant 0 : index
    %c0_8 = arith.constant 0 : index
    %6 = vector.load %arg5[%c0_7, %c0_8] : memref<1x32xf32, #tpu.memory_space<vmem>>, vector<1x32xf32>
    %7 = arith.addf %5, %6 : vector<1x32xf32>
    %c0_9 = arith.constant 0 : index
    %c0_10 = arith.constant 0 : index
    %8 = vector.load %arg4[%c0_9, %c0_10] : memref<32x32xf32, #tpu.memory_space<vmem>>, vector<32x32xf32>
    %cst_11 = arith.constant dense<0.000000e+00> : vector<8x32xf32>
    %9 = tpu.matmul %3, %8, %cst_11 {dimension_numbers = #tpu.dot_dimension_numbers<[1], [0], [0], [1], [0, 0, 1, 1], [], []>} : vector<8x32xf32>, vector<32x32xf32>, vector<8x32xf32> -> vector<8x32xf32>
    %10 = vector.broadcast %7 : vector<1x32xf32> to vector<8x32xf32>
    %11 = arith.addf %9, %10 : vector<8x32xf32>
    %12 = math.tanh %11 : vector<8x32xf32>
    %c0_12 = arith.constant 0 : index
    %c0_13 = arith.constant 0 : index
    %13 = vector.load %arg6[%c0_12, %c0_13] : memref<1x32xf32, #tpu.memory_space<vmem>>, vector<1x32xf32>
    %cst_14 = arith.constant dense<0.000000e+00> : vector<1x8xf32>
    %14 = tpu.matmul %13, %12, %cst_14 {dimension_numbers = #tpu.dot_dimension_numbers<[1], [1], [0], [0], [0, 0, 1, 0], [], []>} : vector<1x32xf32>, vector<8x32xf32>, vector<1x8xf32> -> vector<1x8xf32>
    %cst_15 = arith.constant dense<0xFF800000> : vector<1xf32>
    %15 = vector.multi_reduction <maximumf>, %14, %cst_15 [1] : vector<1x8xf32> to vector<1xf32>
    %16 = vector.shape_cast %15 : vector<1xf32> to vector<1x1xf32>
    %17 = vector.broadcast %16 : vector<1x1xf32> to vector<1x8xf32>
    %18 = arith.subf %14, %17 : vector<1x8xf32>
    %19 = math.exp %18 : vector<1x8xf32>
    %cst_16 = arith.constant dense<0.000000e+00> : vector<1xf32>
    %20 = vector.multi_reduction <add>, %19, %cst_16 [1] : vector<1x8xf32> to vector<1xf32>
    %21 = vector.shape_cast %20 : vector<1xf32> to vector<1x1xf32>
    %22 = vector.broadcast %21 : vector<1x1xf32> to vector<1x8xf32>
    %23 = arith.divf %19, %22 : vector<1x8xf32>
    %c0_17 = arith.constant 0 : index
    %c0_18 = arith.constant 0 : index
    %c0_19 = arith.constant 0 : index
    %24 = vector.load %arg7[%c0_17, %c0_18, %c0_19] : memref<1x1x8xf32, #tpu.memory_space<vmem>>, vector<1x1x8xf32>
    %25 = vector.shape_cast %24 : vector<1x1x8xf32> to vector<1x8xf32>
    %26 = vector.shape_cast %23 : vector<1x8xf32> to vector<1x1x8xf32>
    tpu.vector_store %arg7[%c0_17, %c0_18, %c0_19], %26 {strides = array<i32>} : memref<1x1x8xf32, #tpu.memory_space<vmem>>, vector<1x1x8xf32>,
    return
  }
  func.func @transform_0(%arg0: i32) -> (i32, i32, i32) {
    %c0_i32 = arith.constant 0 : i32
    %c0_i32_0 = arith.constant 0 : i32
    %c0_i32_1 = arith.constant 0 : i32
    return %arg0, %c0_i32, %c0_i32_0 : i32, i32, i32
  }
  func.func @transform_1(%arg0: i32) -> (i32, i32, i32) {
    %c0_i32 = arith.constant 0 : i32
    %c0_i32_0 = arith.constant 0 : i32
    %c0_i32_1 = arith.constant 0 : i32
    return %arg0, %c0_i32, %c0_i32_0 : i32, i32, i32
  }
  func.func @transform_2(%arg0: i32) -> (i32, i32) {
    %c0_i32 = arith.constant 0 : i32
    %c0_i32_0 = arith.constant 0 : i32
    %c0_i32_1 = arith.constant 0 : i32
    return %c0_i32, %c0_i32_0 : i32, i32
  }
  func.func @transform_3(%arg0: i32) -> (i32, i32) {
    %c0_i32 = arith.constant 0 : i32
    %c0_i32_0 = arith.constant 0 : i32
    %c0_i32_1 = arith.constant 0 : i32
    return %c0_i32, %c0_i32_0 : i32, i32
  }
  func.func @transform_4(%arg0: i32) -> (i32, i32) {
    %c0_i32 = arith.constant 0 : i32
    %c0_i32_0 = arith.constant 0 : i32
    %c0_i32_1 = arith.constant 0 : i32
    return %c0_i32, %c0_i32_0 : i32, i32
  }
  func.func @transform_5(%arg0: i32) -> (i32, i32) {
    %c0_i32 = arith.constant 0 : i32
    %c0_i32_0 = arith.constant 0 : i32
    %c0_i32_1 = arith.constant 0 : i32
    return %c0_i32, %c0_i32_0 : i32, i32
  }
  func.func @transform_6(%arg0: i32) -> (i32, i32, i32) {
    %c0_i32 = arith.constant 0 : i32
    %c0_i32_0 = arith.constant 0 : i32
    %c0_i32_1 = arith.constant 0 : i32
    return %arg0, %c0_i32, %c0_i32_0 : i32, i32, i32
  }
}

</mosaic_0001>

<bundles_post_ra>
// kernel: attention_forward.1
= control target key start
LH: loop header
LB: loop body
LE: loop exit
PB: predicated region body
PF: predicated region fallthrough
CT: control target
= control target key end

     0   :  { %11 = vsyncpa [#allocation3], 0  ;;  %s1072_s0 = inlined_call_operand.vmem [shape: f32[2,1,32], index: 0, kind: input, shape index: {}]   ;;  %s1073_s1 = inlined_call_operand.hbm [shape: f32[2,8,32], index: 1, kind: input, shape index: {}]   ;;  %s1074_s2 = inlined_call_operand.hbm [shape: f32[32,32], index: 2, kind: input, shape index: {}]   ;;  %s1075_s3 = inlined_call_operand.hbm [shape: f32[32,32], index: 3, kind: input, shape index: {}]   ;;  %s1076_s4 = inlined_call_operand.hbm [shape: f32[1,32], index: 4, kind: input, shape index: {}]   ;;  %s1077_s5 = inlined_call_operand.vmem [shape: f32[1,32], index: 5, kind: input, shape index: {}]   ;;  %s1078_s6 = inlined_call_operand.hbm [shape: f32[2,1,8], index: 6, kind: output, shape index: {}]  }
   0x1   :  { %13 = vsyncpa [#allocation3 + $0x1], 0 }
   0x2   :  { %14 = vsyncpa [#allocation6], 0 }
   0x3   :  { %15 = vsyncpa [#allocation9], 0 }
   0x4   :  { %16 = vsyncpa [#allocation4], 0 }
   0x5   :  { %18 = vsyncpa [#allocation4 + $0x1], 0  ;;  %s900_s21 = smov 0   ;;  %s902_s22 = smov 0  }
   0x6   :  { %s904_s23 = smov 0   ;;  %s906_s24 = smov 0  }
   0x7 LB: > { %s202_s27 = sshll.u32 %s1074_s2, 4  ;;  %s924_s28 = sadd.s32 4294967295, %s858_s24   ;;  %s858_s24 = sphi %s906_s24, %s1089_s24   ;;  %s854_s23 = sphi %s904_s23, %s1088_s23   ;;  %s850_s22 = sphi %s902_s22, %s1087_s22   ;;  %s846_s21 = sphi %s900_s21, %s1086_s21   ;;  %s203_s27 = int_to_ptr.hbm [resolvable:$true] %s202_s27 }
   0x8   : > { %p561_p0 = scmp.ge.s32.totalorder %s858_s24, 1  ;;  %p71_p1 = scmp.eq.s32.totalorder %s924_s28, 0 }
   0x9   : > { %p191_p2 = scmp.lt.s32.totalorder %s858_s24, 3  ;;  %s860_s30 = smov [#allocation5]  }
   0xa   : > { %s204_s7 = sshll.u32 %s860_s30, 4  ;;  %s216_s10 = sshll.u32 %s1075_s3, 4  ;;  %s205_s7 = int_to_ptr.vmem [resolvable:$true] %s204_s7  ;;  %s217_s10 = int_to_ptr.hbm [resolvable:$true] %s216_s10 }
   0xb   : > { %p929_p3 = pnand %p561_p0, %p191_p2  ;;  %s231_s14 = sshll.u32 %s1076_s4, 4  ;;  %s232_s14 = int_to_ptr.hbm [resolvable:$true] %s231_s14 }
   0xc   : > { %s861_s15 = smov [#allocation7]   ;;  %s862_s17 = smov 128  }
   0xd   : > { %p595_p4 = pneg %p929_p3  ;;  %s218_s16 = sshll.u32 %s861_s15, 4  ;;  %s219_s16 = int_to_ptr.vmem [resolvable:$true] %s218_s16 }
   0xe   : > { %s863_s18 = smov 8   ;;  %s864_s19 = smov [#allocation8]  }
   0xf   : > { %p941_p6 = pnand %p595_p4, %p71_p1  ;;  %s233_s20 = sshll.u32 %s864_s19, 4  ;;  %s234_s20 = int_to_ptr.vmem [resolvable:$true] %s233_s20 }
  0x10   : > { %s560_s25 = sadd.s32 4294967294, %s858_s24   ;;  %s956_s26 = sadd.s32 1, %s858_s24  }
  0x11   : > { %598 = dma.hbm_to_vmem [thread:$0]  (!%p941_p6), %s203_s27, 512, %s205_s7, [#allocation6], %s862_s17, %s862_s17, %s863_s18  }
  0x12   : > { %601 = dma.hbm_to_vmem [thread:$0]  (!%p941_p6), %s217_s10, 512, %s219_s16, [#allocation6], %s862_s17, %s862_s17, %s863_s18  }
  0x13   : > { %604 = dma.hbm_to_vmem [thread:$0]  (!%p941_p6), %s232_s14, 16, %s234_s20, [#allocation9]  }
  0x14   : > { %s57_s30 = sadd.s32 1, %s854_s23  ;;  %s54_s27 = ssub.s32 %s858_s24, %s956_s26 }
  0x15   : > { %p64_p7 = scmp.ne.s32.totalorder %s854_s23, %s850_s22  ;;  %p55_p8 = scmp.eq.s32.totalorder %s54_s27, 0 }
  0x16   : > { %p65_p9 = scmp.eq.s32.totalorder %s858_s24, 0  ;;  %p70_p10 = scmp.ne.s32.totalorder %s850_s22, %s846_s21 }
  0x17   : > { %p178_p11 = scmp.eq.s32.totalorder %s924_s28, 1  ;;  %p184_p0 = scmp.eq.s32.totalorder %s560_s25, 1 }
  0x18   : > { %s968_s7 = scalar_select %p55_p8, %s854_s23, %s57_s30  }
  0x19   : > { %p972_p12 = por %p71_p1, %p70_p10  ;;  %p976_p13 = por %p178_p11, %p64_p7 }
  0x1a   : > { %p66_p2 = por %p65_p9, %p64_p7  ;;  %s253_s10 = sand.u32 1, %s854_s23  }
  0x1b   : > { %p981_p4 = por %p184_p0, %p70_p10  ;;  %p616_p6 = scmp.lt.s32.totalorder %s858_s24, 2 }
  0x1c   : > { %s566_s12 = sshll.u32 %s253_s10, 3  ;;  %s567_s13 = sshll.u32 %s858_s24, 3 }
  0x1d   : > { %s261_s16 = scalar_lea.hbm %s1073_s1, %s567_s13  ;;  %s257_s18 = scalar_lea.vmem [#allocation2], %s566_s12 }
  0x1e   : > { %s263_s17 = sshll.u32 %s261_s16, 4  ;;  %s265_s19 = sshll.u32 %s257_s18, 4  ;;  %s264_s17 = int_to_ptr.hbm [resolvable:$true] %s263_s17  ;;  %s266_s19 = int_to_ptr.vmem [resolvable:$true] %s265_s19 }
  0x1f   : > { %p990_p8 = pnand %p616_p6, %p66_p2  ;;  %s254_s25 = scalar_lea.sflag [#allocation3], %s253_s10 }
  0x20   : > { %s754_s30 = sshra.s32 %s264_s17, 4  ;;  %s761_s12 = scalar_lea.hbm %s1073_s1, 16  ;;  %s755_s30 = int_to_ptr.hbm [resolvable:$true] %s754_s30 }
  0x21   : > { %s756_s27 = scalar_lea.hbm %s755_s30, 8  ;;  %p758_p9 = pneg %p990_p8 }
  0x22   : > { %p757_p7 = scmp.ne.s32.totalorder %s755_s30, %s756_s27  ;;  %p762_p0 = scmp.lt.s32.totalorder %s755_s30, %s1073_s1 }
  0x23   : > { %p763_p2 = scmp.lt.s32.totalorder %s761_s12, %s756_s27 }
  0x24   : > { %p759_p10 = pnand %p758_p9, %p757_p7 }
  0x25   : > { %p764_p6 = por %p763_p2, %p762_p0 }
  0x26   : > { %p760_p11 = pneg %p759_p10 }
  0x28   : > { %p765_p5 = pnand %p764_p6, %p760_p11 }
  0x2a   : > { %768 = shalt.err (!%p765_p5)
}
  0x2b   : > { %608 = dma.hbm_to_vmem [thread:$0]  (!%p990_p8), %s264_s17, 128, %s266_s19, %s254_s25  }
  0x2c   : > { %274 = sbr.rel (%p929_p3) target bundleno = 603 (0x25b), region = 44  ;;  %s1007_s10 = sand.u32 (!%p929_p3), 1, %s850_s22  }
  0x2d   : > { %s569_s18 = sshll.u32 (!%p929_p3), %s1007_s10, 3  ;;  %s277_s13 = scalar_lea.sflag (!%p929_p3), [#allocation3], %s1007_s10 }
  0x2e   : > { %s280_s14 = scalar_lea.vmem (!%p929_p3), [#allocation2], %s569_s18 }
  0x31   : > { %829 = dma.done.wait (%p972_p12), %s277_s13, 128  }
  0x32   : > { %831 = vsyncadd (%p972_p12), %s277_s13, 4294967168 }
  0x33   : > { %833 = dma.done.wait (%p71_p1), [#allocation6], 1024  }
  0x34   : > { %835 = vsyncadd (%p71_p1), [#allocation6], 4294966272 }
  0x35   : > { %837 = dma.done.wait (%p71_p1), [#allocation9], 16  }
  0x36   : > { %839 = vsyncadd (%p71_p1), [#allocation9], 4294967280  ;;  %p327_p3 = scmp.lt.s32.totalorder %s924_s28, 1  ;;  %v335_v0 = vld [vmem:[#allocation5 + $0x18] sm:$0xff]  ;;  %v334_v1 = vld [vmem:[#allocation5 + $0x10] sm:$0xff]  ;;  %vm337_vm0 = vcmask 261120   ;;  %s452_s12 = scalar_lea.hbm %s1078_s6, %s924_s28 }
  0x37   : > { %353 = vmatpush.msra.mxu0 %v335_v0  ;;  %v364_v2 = vld [vmem:[#allocation7 + $0x18] sm:$0xff]  ;;  %v363_v3 = vld [vmem:[#allocation7 + $0x10] sm:$0xff]  ;;  %v333_v4 = vld [vmem:[#allocation5 + $0x8] sm:$0xff]  ;;  %vm417_vm1 = vcmask 57344   ;;  %s326_s15 = scalar_lea.vmem [#allocation10], %s1007_s10  ;;  %s456_s18 = sshll.u32 %s452_s12, 4  ;;  %s457_s18 = int_to_ptr.hbm [resolvable:$true] %s456_s18 }
  0x38   : > { %s328_s29 = scalar_select %p327_p3, %s924_s28, 1  ;;  %381 = vmatpush.msra.mxu1 %v364_v2  ;;  %v362_v5 = vld [vmem:[#allocation7 + $0x8] sm:$0xff]  ;;  %v332_v6 = vld [vmem:[#allocation5] sm:$0xff]  ;;  %v331_v9 = vld [vmem:[%s280_s14] sm:$0xff] }
  0x39   : > { %354 = vmatpush.msra.mxu0 %v334_v1  ;;  %v361_v8 = vld [vmem:[#allocation7] sm:$0xff]  ;;  %v390_v17 = vld [vmem:[%s1077_s5] sm:$0x1]  ;;  %s454_s16 = sshll.u32 %s326_s15, 4  ;;  %s444_s13 = scalar_lea.sflag [#allocation4], %s1007_s10  ;;  %s455_s16 = int_to_ptr.vmem [resolvable:$true] %s454_s16 }
  0x3a   : > { %s329_s19 = scalar_lea.vmem %s1072_s0, %s328_s29  ;;  %382 = vmatpush.msra.mxu1 %v363_v3  ;;  %v336_v10 = vld [vmem:[#allocation8] sm:$0x1]  ;;  %s798_s14 = sshra.s32 %s457_s18, 4  ;;  %s799_s14 = int_to_ptr.hbm [resolvable:$true] %s798_s14 }
  0x3b   : > { %355 = vmatpush.msra.mxu0 %v333_v4  ;;  %v330_v7 = vld [vmem:[%s329_s19] sm:$0x1]  ;;  %s800_s28 = scalar_lea.hbm %s799_s14, 1  ;;  %s804_s17 = scalar_lea.hbm %s1078_s6, 2 }
  0x3c   : > { %383 = vmatpush.msra.mxu1 %v362_v5  ;;  %p801_p1 = scmp.ne.s32.totalorder %s799_s14, %s800_s28  ;;  %p805_p8 = scmp.lt.s32.totalorder %s799_s14, %s1078_s6 }
  0x3d   : > { %356 = vmatpush.msra.mxu0 %v332_v6  ;;  %p806_p7 = scmp.lt.s32.totalorder %s804_s17, %s800_s28 }
  0x3e   : > { %573 = vmatmul.msk.f32.vlgmr.msra.gmra.mxu0 %vm337_vm0, %v330_v7  ;;  %384 = vmatpush.msra.mxu1 %v361_v8  ;;  %p802_p5 = pnand %p801_p1, %p976_p13 }
  0x3f   : > { %574 = vmatmul.msk.f32.vlgmr.msra.gmra.mxu1 %vm337_vm0, %v331_v9  ;;  %p807_p9 = por %p806_p7, %p805_p8 }
  0x40   : > { %p803_p12 = pneg %p802_p5 }
  0x42   : > { %p808_p10 = pnand %p807_p9, %p803_p12 }
  0xbb   : > { %v358_v11 = vpop.f32.mrf.mxu0 }
  0xbc   : > { %v359_v12 = vadd.f32 %v358_v11, %v336_v10  ;;  %v386_v13 = vpop.f32.mrf.mxu1 }
  0xbe   : > { %v365_v14 = vperm.slane %v359_v12, 0 }
  0xc0   : > { %v387_v15 = vadd.f32 %v386_v13, %v365_v14 }
  0xc2   : > { %658 = vtanh.f32 %v387_v15 }
  0xc8   : > { %v659_v16 = vpop.eup %658 }
  0xc9   : > { %575 = vmatpush.xpose.msk.msra.mxu2 %vm337_vm0, %v659_v16 }
  0xcc   : > { %576 = vmatmul.msk.f32.vlgmr.msra.gmra.mxu2 %vm337_vm0, %v390_v17 }
 0x14f   : > { %v414_v18 = vpop.f32.mrf.mxu2 }
 0x150   : > { %v418_v19 = vsel %vm417_vm1, %v414_v18, -inf }
 0x151   : > { %419 = vmax.xlane.f32.xlu0 %v418_v19 }
 0x1c4   : > { %v420_v20 = vpop.xlane.xlu0 %419 }
 0x1c5   : > { %v421_v21 = vsub.f32 %v414_v18, %v420_v20 }
 0x1c7   : > { %v422_v22 = vmul.f32 1.442695, %v421_v21 }
 0x1c9   : > { %660 = vpow2.f32 %v422_v22 }
 0x1cf   : > { %v661_v23 = vpop.eup %660 }
 0x1d0   : > { %v424_v24 = vsel %vm417_vm1, %v661_v23, 0.0 }
 0x1d1   : > { %425 = vadd.xlane.f32.xlu0 %v424_v24 }
 0x244   : > { %v426_v25 = vpop.xlane.xlu0 %425 }
 0x245   : > { %662 = vrcp.f32 %v426_v25  ;;  %v438_v29 = vand.u32 2147483648, %v426_v25  ;;  %v436_v31 = vand.u32 2147483647, %v426_v25  ;;  %vm432_vm3 = vweird.f32 %v426_v25 }
 0x247   : > { %v439_v33 = vor.u32 1.1754944e-38, %v438_v29  ;;  %vm437_vm5 = vcmp.eq.f32.partialorder %v436_v31, 8.507059e+37 }
 0x24b   : > { %v663_v26 = vpop.eup %662 }
 0x24c   : > { %v428_v27 = vmul.f32 %v663_v26, %v426_v25  ;;  %vm433_vm2 = vweird.f32 %v663_v26 }
 0x24d   : > { %vm434_vm4 = vmor %vm432_vm3, %vm433_vm2 }
 0x24e   : > { %v429_v28 = vsub.f32 1.0, %v428_v27 }
 0x250   : > { %v430_v30 = vmul.f32 %v663_v26, %v429_v28 }
 0x252   : > { %v431_v32 = vadd.f32 %v663_v26, %v430_v30 }
 0x254   : > { %v435_v34 = vsel %vm434_vm4, %v663_v26, %v431_v32 }
 0x255   : > { %v440_v35 = vsel %vm437_vm5, %v439_v33, %v435_v34 }
 0x256   : > { %v441_v36 = vmul.f32 %v661_v23, %v440_v35 }
 0x258   : > { %442 = vst.msk [vmem:[%s326_s15] sm:$0x1] %vm417_vm1, %v441_v36 }
 0x259   : > { %811 = shalt.err (!%p808_p10)
}
 0x25a   : > { %593 = dma.vmem_to_hbm [thread:$0]  (%p976_p13), %s455_s16, 16, %s457_s18, %s444_s13  }
 0x25b PF: > { %s468_s10 = sand.u32 1, %s846_s21   ;;  %p1085_p11 = scmp.ge.s32.totalorder %s858_s24, 2 }
 0x25c   : > { %s469_s25 = scalar_lea.sflag [#allocation4], %s468_s10 }
 0x25d   : > { %p610_p0 = pnand %p1085_p11, %p981_p4 }
 0x25f   : > { %p611_p2 = pneg %p610_p0 }
 0x261   : > { %841 = dma.done.wait (%p611_p2), %s469_s25, 16  }
 0x262   : > { %843 = vsyncadd (%p611_p2), %s469_s25, 4294967280  ;;  %p21_p6 = scmp.ge.s32.totalorder %s956_s26, 4   ;;  %s1086_s21 = smov %s850_s22 }
 0x263   : > { %s1087_s22 = smov %s854_s23  ;;  %s1088_s23 = smov %s968_s7 }
 0x264   : > { %s1089_s24 = smov %s956_s26  ;;  %23 = sbr.rel (!%p21_p6) target bundleno = 7 (0x7), region = 104 }
 0x269   :  { %474 = vsyncpa [#allocation3], 1 }
 0x26a   :  { %476 = vsyncpa [#allocation3 + $0x1], 1 }
 0x26b   :  { %477 = vsyncpa [#allocation6], 1 }
 0x26c   :  { %478 = vsyncpa [#allocation9], 1 }
 0x26d   :  { %479 = vsyncpa [#allocation4], 1 }
 0x26e   :  { %481 = vsyncpa [#allocation4 + $0x1], 1 }

</bundles_post_ra>
